<compile_context>
chip_gen: v7x
topology: tpu7x:2x2x1
jax: 0.10.0
libtpu: 0.0.40
codegen_flags: <defaults>
</compile_context>

<pallas_src>
import functools

import jax
import jax.numpy as jnp
from jax.experimental import pallas as pl
from jax.experimental.pallas import tpu as pltpu

LN_EPS = 1e-3  # matches the seq2seq LayerNormalization default


def _round_up(x, m):
    return ((x + m - 1) // m) * m


def _vmem_capacity_bytes():
    """Physical VMEM of the current chip; conservative (v7x-sized) default if unknown."""
    try:
        return int(pltpu.get_tpu_info().vmem_capacity_bytes)
    except Exception:  # info query only — never masks kernel compile errors
        return 64 << 20


def _default_row_tile(vmem_cap, d_inner):
    if vmem_cap >= (100 << 20):                 # v5e / v6e: 128 MiB VMEM
        return 1024 if d_inner <= 4096 else 512
    return 256                                   # v7x: 64 MiB VMEM


def _choose_inner_tile(d_hid, d_inner, compute_dtype, vmem_cap):
    """Largest d_inner chunk whose weight tiles fit a VMEM weight budget."""
    cb = jnp.dtype(compute_dtype).itemsize
    budget = max(8 << 20, int(0.35 * vmem_cap))
    if 2 * d_hid * d_inner * cb <= budget:       # both weights fully resident (1 buffer)
        return d_inner
    tk = d_inner
    # streamed chunks are double-buffered -> factor 2*2
    while tk > 128 and tk % 2 == 0 and 2 * 2 * d_hid * tk * cb > budget:
        tk //= 2
    return tk


def _ffn_kernel(x_ref, w1_ref, b1_ref, w2_ref, b2_ref, g_ref, beta_ref, o_ref,
                *maybe_acc, d_hid, compute_dtype, num_inner_chunks, approx_recip):
    acc_ref = maybe_acc[0] if maybe_acc else None

    # 1x1 conv #1 == MXU matmul (compute_dtype inputs, f32 accumulation).
    # Fuse bias + ReLU + narrow cast so the f32 (rows, tk) tile dies immediately.
    xc = x_ref[...].astype(compute_dtype)
    h = jnp.maximum(
        jnp.dot(xc, w1_ref[...], preferred_element_type=jnp.float32) + b1_ref[...],
        0.0).astype(compute_dtype)

    # 1x1 conv #2 partial product for this d_inner chunk.
    part = jnp.dot(h, w2_ref[...], preferred_element_type=jnp.float32)

    def epilogue(y):
        xf = x_ref[...].astype(jnp.float32)
        # TODO(synk): dropout is identity at inference; training-mode dropout not implemented.
        z = y + b2_ref[...] + xf  # bias + residual, f32
        # LayerNormalization over last dim (unbiased std, eps added to sigma — matches the
        # seq2seq module, NOT torch.nn.LayerNorm).
        mu = jnp.mean(z, axis=-1, keepdims=True)
        var = jnp.sum((z - mu) ** 2, axis=-1, keepdims=True) * (1.0 / (d_hid - 1))
        sigma = jnp.sqrt(var) + LN_EPS
        inv = pl.reciprocal(sigma, approx=True) if approx_recip else 1.0 / sigma
        ln = (z - mu) * inv
        o_ref[...] = (ln * g_ref[...] + beta_ref[...]).astype(o_ref.dtype)

    if num_inner_chunks == 1:
        # Fully-resident weights: no accumulator round-trip needed.
        epilogue(part)
    else:
        k = pl.program_id(1)

        @pl.when(k == 0)
        def _():
            acc_ref[...] = jnp.zeros_like(acc_ref)

        acc_ref[...] += part

        @pl.when(k == num_inner_chunks - 1)
        def _():
            epilogue(acc_ref[...])


def prepare_ffn_params(w1, b1, w2, b2, gamma, beta, compute_dtype=jnp.bfloat16):
    """One-time parameter prep (hoisted out of the per-call path).

    w1: (d_inner, d_hid), w2: (d_hid, d_inner) — torch Conv1d weights with the trailing
    kernel dim squeezed. Weights are pre-transposed + cast to the MXU dtype; biases /
    gamma / beta stay f32 for the f32 epilogue."""
    d_inner, d_hid = w1.shape
    w1_t = jnp.asarray(w1).T.astype(compute_dtype)            # (d_hid, d_inner)
    w2_t = jnp.asarray(w2).T.astype(compute_dtype)            # (d_inner, d_hid)
    b1_2d = jnp.asarray(b1, jnp.float32).reshape(1, d_inner)
    b2_2d = jnp.asarray(b2, jnp.float32).reshape(1, d_hid)
    g_2d = jnp.asarray(gamma, jnp.float32).reshape(1, d_hid)
    beta_2d = jnp.asarray(beta, jnp.float32).reshape(1, d_hid)
    return w1_t, b1_2d, w2_t, b2_2d, g_2d, beta_2d


def _vmem_budget_bytes(row_tile, d_hid, d_inner, tk, io_itemsize, compute_dtype,
                       single_buffer_weights, vmem_cap):
    f32 = 4
    cb = jnp.dtype(compute_dtype).itemsize
    chunked = tk < d_inner
    wbuf = 2 if (chunked or not single_buffer_weights) else 1
    io = 2 * 2 * row_tile * d_hid * io_itemsize            # x + out, double-buffered
    weights = 2 * d_hid * tk * cb * wbuf                    # W1^T + W2^T (chunk)
    vectors = (2 * tk + 6 * d_hid) * f32 * 2                # biases / gamma / beta
    acc = row_tile * d_hid * f32 if chunked else 0          # accumulator scratch
    working = row_tile * (2 * tk + 3 * d_hid) * f32         # live intermediates
    est = io + weights + vectors + acc + working + (4 << 20)
    cap = int(0.88 * vmem_cap)                              # never exceed physical VMEM
    return int(min(max(est, 16 << 20), cap))


def positionwise_ffn_prepped(x, params, *, row_tile=None, inner_tile=None,
                             compute_dtype=jnp.bfloat16, single_buffer_weights=True,
                             ln_approx_reciprocal=True):
    """x: (B, L, d_hid), params from prepare_ffn_params(). Returns (B, L, d_hid)."""
    w1_t, b1_2d, w2_t, b2_2d, g_2d, beta_2d = params
    B, L, d_hid = x.shape
    d_inner = w1_t.shape[1]

    rows = B * L
    x2 = x.reshape(rows, d_hid)

    vmem_cap = _vmem_capacity_bytes()

    # --- row tiling -----------------------------------------------------------
    rt = row_tile if row_tile is not None else _default_row_tile(vmem_cap, d_inner)
    rt = max(8, min(rt, _round_up(rows, 8)))     # don't over-pad tiny inputs
    rt = _round_up(rt, 8)
    # Give the "parallel" row axis >= 2 steps when there's enough work, so v7x's two
    # TensorCores both get a share (v5e/v6e: one extra grid step, negligible).
    if rows >= 512 and pl.cdiv(rows, rt) < 2:
        rt = _round_up(pl.cdiv(rows, 2), 256)
    padded_rows = _round_up(rows, rt)
    if padded_rows != rows:
        # Zero rows flow harmlessly through matmul + LayerNorm (sigma+eps > 0).
        x2 = jnp.pad(x2, ((0, padded_rows - rows), (0, 0)))

    # --- d_inner chunking (weight streaming for VMEM-limited chips) -----------
    tk = inner_tile if inner_tile is not None else _choose_inner_tile(
        d_hid, d_inner, compute_dtype, vmem_cap)
    assert d_inner % tk == 0, "inner_tile must divide d_inner"
    nk = d_inner // tk
    chunked = nk > 1

    grid = (padded_rows // rt, nk)

    def const_spec(shape):
        # Constant index_map => loop-invariant operand; single-buffer it to halve its
        # VMEM footprint (the default would double-buffer it).
        if single_buffer_weights:
            return pl.BlockSpec(shape, lambda i, k: (0, 0), pipeline_mode=pl.Buffered(1))
        return pl.BlockSpec(shape, lambda i, k: (0, 0))

    if chunked:
        w1_spec = pl.BlockSpec((d_hid, tk), lambda i, k: (0, k))
        b1_spec = pl.BlockSpec((1, tk), lambda i, k: (0, k))
        w2_spec = pl.BlockSpec((tk, d_hid), lambda i, k: (k, 0))
        scratch_shapes = [pltpu.VMEM((rt, d_hid), jnp.float32)]
    else:
        w1_spec = const_spec((d_hid, d_inner))
        b1_spec = const_spec((1, d_inner))
        w2_spec = const_spec((d_inner, d_hid))
        scratch_shapes = []

    vmem_bytes = _vmem_budget_bytes(rt, d_hid, d_inner, tk, x.dtype.itemsize,
                                    compute_dtype, single_buffer_weights, vmem_cap)

    cb = jnp.dtype(compute_dtype).itemsize
    cost = pl.CostEstimate(
        flops=4 * padded_rows * d_hid * d_inner,
        transcendentals=2 * padded_rows,                      # sqrt + reciprocal per row
        bytes_accessed=(2 * padded_rows * d_hid * x.dtype.itemsize    # x in + out
                        + 2 * d_hid * d_inner * cb                    # W1^T + W2^T
                        + (2 * d_inner + 6 * d_hid) * 4))

    out2 = pl.pallas_call(
        functools.partial(_ffn_kernel, d_hid=d_hid, compute_dtype=compute_dtype,
                          num_inner_chunks=nk, approx_recip=ln_approx_reciprocal),
        out_shape=jax.ShapeDtypeStruct((padded_rows, d_hid), x.dtype),
        grid_spec=pltpu.PrefetchScalarGridSpec(
            num_scalar_prefetch=0,
            grid=grid,
            in_specs=[
                pl.BlockSpec((rt, d_hid), lambda i, k: (i, 0)),   # x tile (pipelined)
                w1_spec,                                           # W1^T (chunk)
                b1_spec,                                           # b1   (chunk)
                w2_spec,                                           # W2^T (chunk)
                const_spec((1, d_hid)),                            # b2
                const_spec((1, d_hid)),                            # gamma
                const_spec((1, d_hid)),                            # beta
            ],
            out_specs=pl.BlockSpec((rt, d_hid), lambda i, k: (i, 0)),
            scratch_shapes=scratch_shapes,
        ),
        compiler_params=pltpu.CompilerParams(
            dimension_semantics=("parallel", "arbitrary"),
            vmem_limit_bytes=vmem_bytes,
        ),
        cost_estimate=cost,
    )(x2, w1_t, b1_2d, w2_t, b2_2d, g_2d, beta_2d)

    if padded_rows != rows:
        out2 = out2[:rows]
    return out2.reshape(B, L, d_hid)


def positionwise_ffn(x, w1, b1, w2, b2, gamma, beta, *, row_tile=None, inner_tile=None,
                     compute_dtype=jnp.bfloat16, single_buffer_weights=True,
                     ln_approx_reciprocal=True):
    params = prepare_ffn_params(w1, b1, w2, b2, gamma, beta, compute_dtype)
    return positionwise_ffn_prepped(
        x, params, row_tile=row_tile, inner_tile=inner_tile,
        compute_dtype=compute_dtype, single_buffer_weights=single_buffer_weights,
        ln_approx_reciprocal=ln_approx_reciprocal)


def _reference(x, w1, b1, w2, b2, gamma, beta, compute_dtype=jnp.bfloat16):
    # Mirrors the kernel's numerics: bf16 matmul inputs, f32 accumulation, f32 epilogue.
    xf = x.astype(jnp.float32)
    h = jnp.einsum("bld,di->bli", xf.astype(compute_dtype), w1.T.astype(compute_dtype),
                   preferred_element_type=jnp.float32) + b1
    h = jnp.maximum(h, 0.0)
    y = jnp.einsum("bli,id->bld", h.astype(compute_dtype), w2.T.astype(compute_dtype),
                   preferred_element_type=jnp.float32) + b2
    z = y + xf
    mu = jnp.mean(z, axis=-1, keepdims=True)
    var = jnp.sum((z - mu) ** 2, axis=-1, keepdims=True) / (x.shape[-1] - 1)
    ln = (z - mu) / (jnp.sqrt(var) + LN_EPS)
    return (ln * gamma + beta).astype(x.dtype)


if __name__ == "__main__":
    B, L, d_hid, d_inner = 2, 8, 32, 64

    key = jax.random.PRNGKey(0)
    kx, kw1, kb1, kw2, kb2 = jax.random.split(key, 5)

    x = jax.random.normal(kx, (B, L, d_hid), dtype=jnp.float32)

    # Deterministic init (uniform +/- 1/sqrt(fan_in), like torch Conv1d default).
    lim1 = 1.0 / (d_hid ** 0.5)
    lim2 = 1.0 / (d_inner ** 0.5)
    w1 = jax.random.uniform(kw1, (d_inner, d_hid), minval=-lim1, maxval=lim1)
    b1 = jax.random.uniform(kb1, (d_inner,), minval=-lim1, maxval=lim1)
    w2 = jax.random.uniform(kw2, (d_hid, d_inner), minval=-lim2, maxval=lim2)
    b2 = jax.random.uniform(kb2, (d_hid,), minval=-lim2, maxval=lim2)
    gamma = jnp.ones((d_hid,), jnp.float32)
    beta = jnp.zeros((d_hid,), jnp.float32)

    try:
        out = positionwise_ffn(x, w1, b1, w2, b2, gamma, beta)
        out = jax.block_until_ready(out)
    except Exception as primary_err:
        # Retry once with default double-buffered invariants (only plausible failure mode
        # is pipeline_mode=pl.Buffered(1) being rejected by this jax build). If the retry
        # also fails, re-raise the ORIGINAL error so nothing is silently masked.
        try:
            out = positionwise_ffn(x, w1, b1, w2, b2, gamma, beta,
                                   single_buffer_weights=False)
            out = jax.block_until_ready(out)
        except Exception:
            raise primary_err

    ref = _reference(x, w1, b1, w2, b2, gamma, beta)
    assert out.shape == (B, L, d_hid)
    # Tolerance covers the approximate EUP reciprocal and bf16 matmul rounding.
    assert jnp.allclose(out, ref, atol=5e-3, rtol=5e-3), "mismatch vs reference"

    print("KERNEL_OK")
</pallas_src>

<mosaic_0001>
module attributes {stable_mosaic.version = 11 : i64} {
  func.func @_ffn_kernel(%arg0: i32, %arg1: i32, %arg2: memref<16x32xf32, #tpu.memory_space<vmem>>, %arg3: memref<32x64xbf16, #tpu.memory_space<vmem>>, %arg4: memref<1x64xf32, #tpu.memory_space<vmem>>, %arg5: memref<64x32xbf16, #tpu.memory_space<vmem>>, %arg6: memref<1x32xf32, #tpu.memory_space<vmem>>, %arg7: memref<1x32xf32, #tpu.memory_space<vmem>>, %arg8: memref<1x32xf32, #tpu.memory_space<vmem>>, %arg9: memref<16x32xf32, #tpu.memory_space<vmem>>) attributes {dimension_semantics = [#tpu.dimension_semantics<parallel>, #tpu.dimension_semantics<arbitrary>], iteration_bounds = array<i64: 1, 1>, scalar_prefetch = 0 : i64, scratch_operands = 0 : i64, tpu.core_type = #tpu.core_type<tc>, window_params = [{transform_indices = @transform_0, window_bounds = array<i64: 16, 32>}, {pipeline_mode = #tpu.pipeline_mode<synchronous>, transform_indices = @transform_1, window_bounds = array<i64: 32, 64>}, {pipeline_mode = #tpu.pipeline_mode<synchronous>, transform_indices = @transform_2, window_bounds = array<i64: 1, 64>}, {pipeline_mode = #tpu.pipeline_mode<synchronous>, transform_indices = @transform_3, window_bounds = array<i64: 64, 32>}, {pipeline_mode = #tpu.pipeline_mode<synchronous>, transform_indices = @transform_4, window_bounds = array<i64: 1, 32>}, {pipeline_mode = #tpu.pipeline_mode<synchronous>, transform_indices = @transform_5, window_bounds = array<i64: 1, 32>}, {pipeline_mode = #tpu.pipeline_mode<synchronous>, transform_indices = @transform_6, window_bounds = array<i64: 1, 32>}, {transform_indices = @transform_7, window_bounds = array<i64: 16, 32>}]} {
    %c0 = arith.constant 0 : index
    %c0_0 = arith.constant 0 : index
    %0 = vector.load %arg2[%c0, %c0_0] : memref<16x32xf32, #tpu.memory_space<vmem>>, vector<16x32xf32>
    %1 = arith.truncf %0 : vector<16x32xf32> to vector<16x32xbf16>
    %c0_1 = arith.constant 0 : index
    %c0_2 = arith.constant 0 : index
    %2 = vector.load %arg3[%c0_1, %c0_2] : memref<32x64xbf16, #tpu.memory_space<vmem>>, vector<32x64xbf16>
    %cst = arith.constant dense<0.000000e+00> : vector<16x64xf32>
    %3 = tpu.matmul %1, %2, %cst {dimension_numbers = #tpu.dot_dimension_numbers<[1], [0], [0], [1], [0, 0, 1, 1], [], []>} : vector<16x32xbf16>, vector<32x64xbf16>, vector<16x64xf32> -> vector<16x64xf32>
    %c0_3 = arith.constant 0 : index
    %c0_4 = arith.constant 0 : index
    %4 = vector.load %arg4[%c0_3, %c0_4] : memref<1x64xf32, #tpu.memory_space<vmem>>, vector<1x64xf32>
    %5 = vector.broadcast %4 : vector<1x64xf32> to vector<16x64xf32>
    %6 = arith.addf %3, %5 : vector<16x64xf32>
    %cst_5 = arith.constant 0.000000e+00 : f32
    %7 = vector.broadcast %cst_5 : f32 to vector<16x64xf32>
    %8 = arith.maximumf %6, %7 : vector<16x64xf32>
    %9 = arith.truncf %8 : vector<16x64xf32> to vector<16x64xbf16>
    %c0_6 = arith.constant 0 : index
    %c0_7 = arith.constant 0 : index
    %10 = vector.load %arg5[%c0_6, %c0_7] : memref<64x32xbf16, #tpu.memory_space<vmem>>, vector<64x32xbf16>
    %cst_8 = arith.constant dense<0.000000e+00> : vector<16x32xf32>
    %11 = tpu.matmul %9, %10, %cst_8 {dimension_numbers = #tpu.dot_dimension_numbers<[1], [0], [0], [1], [0, 0, 1, 1], [], []>} : vector<16x64xbf16>, vector<64x32xbf16>, vector<16x32xf32> -> vector<16x32xf32>
    %c0_9 = arith.constant 0 : index
    %c0_10 = arith.constant 0 : index
    %12 = vector.load %arg2[%c0_9, %c0_10] : memref<16x32xf32, #tpu.memory_space<vmem>>, vector<16x32xf32>
    %c0_11 = arith.constant 0 : index
    %c0_12 = arith.constant 0 : index
    %13 = vector.load %arg6[%c0_11, %c0_12] : memref<1x32xf32, #tpu.memory_space<vmem>>, vector<1x32xf32>
    %14 = vector.broadcast %13 : vector<1x32xf32> to vector<16x32xf32>
    %15 = arith.addf %11, %14 : vector<16x32xf32>
    %16 = arith.addf %15, %12 : vector<16x32xf32>
    %cst_13 = arith.constant dense<0.000000e+00> : vector<16xf32>
    %17 = vector.multi_reduction <add>, %16, %cst_13 [1] : vector<16x32xf32> to vector<16xf32>
    %18 = vector.shape_cast %17 : vector<16xf32> to vector<16x1xf32>
    %cst_14 = arith.constant 3.200000e+01 : f32
    %19 = vector.broadcast %cst_14 : f32 to vector<16x1xf32>
    %20 = arith.divf %18, %19 : vector<16x1xf32>
    %21 = vector.broadcast %20 : vector<16x1xf32> to vector<16x32xf32>
    %22 = arith.subf %16, %21 : vector<16x32xf32>
    %23 = arith.mulf %22, %22 : vector<16x32xf32>
    %cst_15 = arith.constant dense<0.000000e+00> : vector<16xf32>
    %24 = vector.multi_reduction <add>, %23, %cst_15 [1] : vector<16x32xf32> to vector<16xf32>
    %25 = vector.shape_cast %24 : vector<16xf32> to vector<16x1xf32>
    %cst_16 = arith.constant 0.0322580636 : f32
    %26 = vector.broadcast %cst_16 : f32 to vector<16x1xf32>
    %27 = arith.mulf %25, %26 : vector<16x1xf32>
    %28 = math.sqrt %27 : vector<16x1xf32>
    %cst_17 = arith.constant 1.000000e-03 : f32
    %29 = vector.broadcast %cst_17 : f32 to vector<16x1xf32>
    %30 = arith.addf %28, %29 : vector<16x1xf32>
    %31 = tpu.reciprocal %30 {approx = true} : vector<16x1xf32> -> vector<16x1xf32>
    %32 = vector.broadcast %20 : vector<16x1xf32> to vector<16x32xf32>
    %33 = arith.subf %16, %32 : vector<16x32xf32>
    %34 = vector.broadcast %31 : vector<16x1xf32> to vector<16x32xf32>
    %35 = arith.mulf %33, %34 : vector<16x32xf32>
    %c0_18 = arith.constant 0 : index
    %c0_19 = arith.constant 0 : index
    %36 = vector.load %arg7[%c0_18, %c0_19] : memref<1x32xf32, #tpu.memory_space<vmem>>, vector<1x32xf32>
    %37 = vector.broadcast %36 : vector<1x32xf32> to vector<16x32xf32>
    %38 = arith.mulf %35, %37 : vector<16x32xf32>
    %c0_20 = arith.constant 0 : index
    %c0_21 = arith.constant 0 : index
    %39 = vector.load %arg8[%c0_20, %c0_21] : memref<1x32xf32, #tpu.memory_space<vmem>>, vector<1x32xf32>
    %40 = vector.broadcast %39 : vector<1x32xf32> to vector<16x32xf32>
    %41 = arith.addf %38, %40 : vector<16x32xf32>
    %c0_22 = arith.constant 0 : index
    %c0_23 = arith.constant 0 : index
    %42 = vector.load %arg9[%c0_22, %c0_23] : memref<16x32xf32, #tpu.memory_space<vmem>>, vector<16x32xf32>
    tpu.vector_store %arg9[%c0_22, %c0_23], %41 {strides = array<i32>} : memref<16x32xf32, #tpu.memory_space<vmem>>, vector<16x32xf32>,
    return
  }
  func.func @transform_0(%arg0: i32, %arg1: i32) -> (i32, i32) {
    %c0_i32 = arith.constant 0 : i32
    %c0_i32_0 = arith.constant 0 : i32
    return %arg0, %c0_i32 : i32, i32
  }
  func.func @transform_1(%arg0: i32, %arg1: i32) -> (i32, i32) {
    %c0_i32 = arith.constant 0 : i32
    %c0_i32_0 = arith.constant 0 : i32
    %c0_i32_1 = arith.constant 0 : i32
    return %c0_i32, %c0_i32_0 : i32, i32
  }
  func.func @transform_2(%arg0: i32, %arg1: i32) -> (i32, i32) {
    %c0_i32 = arith.constant 0 : i32
    %c0_i32_0 = arith.constant 0 : i32
    %c0_i32_1 = arith.constant 0 : i32
    return %c0_i32, %c0_i32_0 : i32, i32
  }
  func.func @transform_3(%arg0: i32, %arg1: i32) -> (i32, i32) {
    %c0_i32 = arith.constant 0 : i32
    %c0_i32_0 = arith.constant 0 : i32
    %c0_i32_1 = arith.constant 0 : i32
    return %c0_i32, %c0_i32_0 : i32, i32
  }
  func.func @transform_4(%arg0: i32, %arg1: i32) -> (i32, i32) {
    %c0_i32 = arith.constant 0 : i32
    %c0_i32_0 = arith.constant 0 : i32
    %c0_i32_1 = arith.constant 0 : i32
    return %c0_i32, %c0_i32_0 : i32, i32
  }
  func.func @transform_5(%arg0: i32, %arg1: i32) -> (i32, i32) {
    %c0_i32 = arith.constant 0 : i32
    %c0_i32_0 = arith.constant 0 : i32
    %c0_i32_1 = arith.constant 0 : i32
    return %c0_i32, %c0_i32_0 : i32, i32
  }
  func.func @transform_6(%arg0: i32, %arg1: i32) -> (i32, i32) {
    %c0_i32 = arith.constant 0 : i32
    %c0_i32_0 = arith.constant 0 : i32
    %c0_i32_1 = arith.constant 0 : i32
    return %c0_i32, %c0_i32_0 : i32, i32
  }
  func.func @transform_7(%arg0: i32, %arg1: i32) -> (i32, i32) {
    %c0_i32 = arith.constant 0 : i32
    %c0_i32_0 = arith.constant 0 : i32
    return %arg0, %c0_i32 : i32, i32
  }
}

module attributes {stable_mosaic.version = 11 : i64} {
  func.func @_ffn_kernel(%arg0: i32, %arg1: i32, %arg2: memref<16x32xf32, #tpu.memory_space<vmem>>, %arg3: memref<32x64xbf16, #tpu.memory_space<vmem>>, %arg4: memref<1x64xf32, #tpu.memory_space<vmem>>, %arg5: memref<64x32xbf16, #tpu.memory_space<vmem>>, %arg6: memref<1x32xf32, #tpu.memory_space<vmem>>, %arg7: memref<1x32xf32, #tpu.memory_space<vmem>>, %arg8: memref<1x32xf32, #tpu.memory_space<vmem>>, %arg9: memref<16x32xf32, #tpu.memory_space<vmem>>) attributes {dimension_semantics = [#tpu.dimension_semantics<parallel>, #tpu.dimension_semantics<arbitrary>], iteration_bounds = array<i64: 1, 1>, scalar_prefetch = 0 : i64, scratch_operands = 0 : i64, tpu.core_type = #tpu.core_type<tc>, window_params = [{transform_indices = @transform_0, window_bounds = array<i64: 16, 32>}, {pipeline_mode = #tpu.pipeline_mode<synchronous>, transform_indices = @transform_1, window_bounds = array<i64: 32, 64>}, {pipeline_mode = #tpu.pipeline_mode<synchronous>, transform_indices = @transform_2, window_bounds = array<i64: 1, 64>}, {pipeline_mode = #tpu.pipeline_mode<synchronous>, transform_indices = @transform_3, window_bounds = array<i64: 64, 32>}, {pipeline_mode = #tpu.pipeline_mode<synchronous>, transform_indices = @transform_4, window_bounds = array<i64: 1, 32>}, {pipeline_mode = #tpu.pipeline_mode<synchronous>, transform_indices = @transform_5, window_bounds = array<i64: 1, 32>}, {pipeline_mode = #tpu.pipeline_mode<synchronous>, transform_indices = @transform_6, window_bounds = array<i64: 1, 32>}, {transform_indices = @transform_7, window_bounds = array<i64: 16, 32>}]} {
    %c0 = arith.constant 0 : index
    %c0_0 = arith.constant 0 : index
    %0 = vector.load %arg2[%c0, %c0_0] : memref<16x32xf32, #tpu.memory_space<vmem>>, vector<16x32xf32>
    %1 = arith.truncf %0 : vector<16x32xf32> to vector<16x32xbf16>
    %c0_1 = arith.constant 0 : index
    %c0_2 = arith.constant 0 : index
    %2 = vector.load %arg3[%c0_1, %c0_2] : memref<32x64xbf16, #tpu.memory_space<vmem>>, vector<32x64xbf16>
    %cst = arith.constant dense<0.000000e+00> : vector<16x64xf32>
    %3 = tpu.matmul %1, %2, %cst {dimension_numbers = #tpu.dot_dimension_numbers<[1], [0], [0], [1], [0, 0, 1, 1], [], []>} : vector<16x32xbf16>, vector<32x64xbf16>, vector<16x64xf32> -> vector<16x64xf32>
    %c0_3 = arith.constant 0 : index
    %c0_4 = arith.constant 0 : index
    %4 = vector.load %arg4[%c0_3, %c0_4] : memref<1x64xf32, #tpu.memory_space<vmem>>, vector<1x64xf32>
    %5 = vector.broadcast %4 : vector<1x64xf32> to vector<16x64xf32>
    %6 = arith.addf %3, %5 : vector<16x64xf32>
    %cst_5 = arith.constant 0.000000e+00 : f32
    %7 = vector.broadcast %cst_5 : f32 to vector<16x64xf32>
    %8 = arith.maximumf %6, %7 : vector<16x64xf32>
    %9 = arith.truncf %8 : vector<16x64xf32> to vector<16x64xbf16>
    %c0_6 = arith.constant 0 : index
    %c0_7 = arith.constant 0 : index
    %10 = vector.load %arg5[%c0_6, %c0_7] : memref<64x32xbf16, #tpu.memory_space<vmem>>, vector<64x32xbf16>
    %cst_8 = arith.constant dense<0.000000e+00> : vector<16x32xf32>
    %11 = tpu.matmul %9, %10, %cst_8 {dimension_numbers = #tpu.dot_dimension_numbers<[1], [0], [0], [1], [0, 0, 1, 1], [], []>} : vector<16x64xbf16>, vector<64x32xbf16>, vector<16x32xf32> -> vector<16x32xf32>
    %c0_9 = arith.constant 0 : index
    %c0_10 = arith.constant 0 : index
    %12 = vector.load %arg2[%c0_9, %c0_10] : memref<16x32xf32, #tpu.memory_space<vmem>>, vector<16x32xf32>
    %c0_11 = arith.constant 0 : index
    %c0_12 = arith.constant 0 : index
    %13 = vector.load %arg6[%c0_11, %c0_12] : memref<1x32xf32, #tpu.memory_space<vmem>>, vector<1x32xf32>
    %14 = vector.broadcast %13 : vector<1x32xf32> to vector<16x32xf32>
    %15 = arith.addf %11, %14 : vector<16x32xf32>
    %16 = arith.addf %15, %12 : vector<16x32xf32>
    %cst_13 = arith.constant dense<0.000000e+00> : vector<16xf32>
    %17 = vector.multi_reduction <add>, %16, %cst_13 [1] : vector<16x32xf32> to vector<16xf32>
    %18 = vector.shape_cast %17 : vector<16xf32> to vector<16x1xf32>
    %cst_14 = arith.constant 3.200000e+01 : f32
    %19 = vector.broadcast %cst_14 : f32 to vector<16x1xf32>
    %20 = arith.divf %18, %19 : vector<16x1xf32>
    %21 = vector.broadcast %20 : vector<16x1xf32> to vector<16x32xf32>
    %22 = arith.subf %16, %21 : vector<16x32xf32>
    %23 = arith.mulf %22, %22 : vector<16x32xf32>
    %cst_15 = arith.constant dense<0.000000e+00> : vector<16xf32>
    %24 = vector.multi_reduction <add>, %23, %cst_15 [1] : vector<16x32xf32> to vector<16xf32>
    %25 = vector.shape_cast %24 : vector<16xf32> to vector<16x1xf32>
    %cst_16 = arith.constant 0.0322580636 : f32
    %26 = vector.broadcast %cst_16 : f32 to vector<16x1xf32>
    %27 = arith.mulf %25, %26 : vector<16x1xf32>
    %28 = math.sqrt %27 : vector<16x1xf32>
    %cst_17 = arith.constant 1.000000e-03 : f32
    %29 = vector.broadcast %cst_17 : f32 to vector<16x1xf32>
    %30 = arith.addf %28, %29 : vector<16x1xf32>
    %31 = tpu.reciprocal %30 {approx = true} : vector<16x1xf32> -> vector<16x1xf32>
    %32 = vector.broadcast %20 : vector<16x1xf32> to vector<16x32xf32>
    %33 = arith.subf %16, %32 : vector<16x32xf32>
    %34 = vector.broadcast %31 : vector<16x1xf32> to vector<16x32xf32>
    %35 = arith.mulf %33, %34 : vector<16x32xf32>
    %c0_18 = arith.constant 0 : index
    %c0_19 = arith.constant 0 : index
    %36 = vector.load %arg7[%c0_18, %c0_19] : memref<1x32xf32, #tpu.memory_space<vmem>>, vector<1x32xf32>
    %37 = vector.broadcast %36 : vector<1x32xf32> to vector<16x32xf32>
    %38 = arith.mulf %35, %37 : vector<16x32xf32>
    %c0_20 = arith.constant 0 : index
    %c0_21 = arith.constant 0 : index
    %39 = vector.load %arg8[%c0_20, %c0_21] : memref<1x32xf32, #tpu.memory_space<vmem>>, vector<1x32xf32>
    %40 = vector.broadcast %39 : vector<1x32xf32> to vector<16x32xf32>
    %41 = arith.addf %38, %40 : vector<16x32xf32>
    %c0_22 = arith.constant 0 : index
    %c0_23 = arith.constant 0 : index
    %42 = vector.load %arg9[%c0_22, %c0_23] : memref<16x32xf32, #tpu.memory_space<vmem>>, vector<16x32xf32>
    tpu.vector_store %arg9[%c0_22, %c0_23], %41 {strides = array<i32>} : memref<16x32xf32, #tpu.memory_space<vmem>>, vector<16x32xf32>,
    return
  }
  func.func @transform_0(%arg0: i32, %arg1: i32) -> (i32, i32) {
    %c0_i32 = arith.constant 0 : i32
    %c0_i32_0 = arith.constant 0 : i32
    return %arg0, %c0_i32 : i32, i32
  }
  func.func @transform_1(%arg0: i32, %arg1: i32) -> (i32, i32) {
    %c0_i32 = arith.constant 0 : i32
    %c0_i32_0 = arith.constant 0 : i32
    %c0_i32_1 = arith.constant 0 : i32
    return %c0_i32, %c0_i32_0 : i32, i32
  }
  func.func @transform_2(%arg0: i32, %arg1: i32) -> (i32, i32) {
    %c0_i32 = arith.constant 0 : i32
    %c0_i32_0 = arith.constant 0 : i32
    %c0_i32_1 = arith.constant 0 : i32
    return %c0_i32, %c0_i32_0 : i32, i32
  }
  func.func @transform_3(%arg0: i32, %arg1: i32) -> (i32, i32) {
    %c0_i32 = arith.constant 0 : i32
    %c0_i32_0 = arith.constant 0 : i32
    %c0_i32_1 = arith.constant 0 : i32
    return %c0_i32, %c0_i32_0 : i32, i32
  }
  func.func @transform_4(%arg0: i32, %arg1: i32) -> (i32, i32) {
    %c0_i32 = arith.constant 0 : i32
    %c0_i32_0 = arith.constant 0 : i32
    %c0_i32_1 = arith.constant 0 : i32
    return %c0_i32, %c0_i32_0 : i32, i32
  }
  func.func @transform_5(%arg0: i32, %arg1: i32) -> (i32, i32) {
    %c0_i32 = arith.constant 0 : i32
    %c0_i32_0 = arith.constant 0 : i32
    %c0_i32_1 = arith.constant 0 : i32
    return %c0_i32, %c0_i32_0 : i32, i32
  }
  func.func @transform_6(%arg0: i32, %arg1: i32) -> (i32, i32) {
    %c0_i32 = arith.constant 0 : i32
    %c0_i32_0 = arith.constant 0 : i32
    %c0_i32_1 = arith.constant 0 : i32
    return %c0_i32, %c0_i32_0 : i32, i32
  }
  func.func @transform_7(%arg0: i32, %arg1: i32) -> (i32, i32) {
    %c0_i32 = arith.constant 0 : i32
    %c0_i32_0 = arith.constant 0 : i32
    return %arg0, %c0_i32 : i32, i32
  }
}

</mosaic_0001>

<bundles_post_ra>
// kernel: tpu_custom_call.1
= control target key start
LH: loop header
LB: loop body
LE: loop exit
PB: predicated region body
PF: predicated region fallthrough
CT: control target
= control target key end

     0   :  { %v348_v1 = vmov 0.0   ;;  %vm349_vm0 = vmmov 0   ;;  %vm54_vm1 = vcmask 261120   ;;  %s448_s0 = inlined_call_operand.vmem [shape: f32[16,32], index: 0, kind: input, shape index: {}]   ;;  %s449_s1 = inlined_call_operand.vmem [shape: bf16[32,64], index: 1, kind: input, shape index: {}]   ;;  %s450_s2 = inlined_call_operand.vmem [shape: f32[1,64], index: 2, kind: input, shape index: {}]   ;;  %s451_s3 = inlined_call_operand.vmem [shape: bf16[64,32], index: 3, kind: input, shape index: {}]   ;;  %s452_s4 = inlined_call_operand.vmem [shape: f32[1,32], index: 4, kind: input, shape index: {}]   ;;  %s453_s5 = inlined_call_operand.vmem [shape: f32[1,32], index: 5, kind: input, shape index: {}]   ;;  %s454_s6 = inlined_call_operand.vmem [shape: f32[1,32], index: 6, kind: input, shape index: {}]   ;;  %s455_s7 = inlined_call_operand.hbm [shape: f32[16,32], index: 7, kind: output, shape index: {}]  }
   0x1   :  { %v310_v0 = vld [vmem:[%s449_s1] sm:$0xff]   ;;  %285 = vmatprep.subr.bf16.mxu0 %v348_v1  ;;  %v311_v2 = vld [vmem:[%s449_s1 + $0x8] sm:$0xff]   ;;  %293 = vmatprep.subr.bf16.mxu1 %v348_v1 }
   0x2   :  { %286 = vmatpush3.bf16.msra.mxu0 %v310_v0  ;;  %289 = vmatprep.mubr.msk.bf16.mxu0 %vm349_vm0, %v348_v1  ;;  %v28_v3 = vld [vmem:[%s448_s0] sm:$0xff]  ;;  %v29_v4 = vld [vmem:[%s448_s0 + $0x8] sm:$0xff] }
   0x3   :  { %287 = vmatprep.subr.bf16.mxu0 %v348_v1  ;;  %v312_v5 = vld [vmem:[%s451_s3] sm:$0xff]   ;;  %301 = vmatprep.mubr.msk.bf16.mxu1 %vm349_vm0, %v348_v1  ;;  %v313_v6 = vld [vmem:[%s451_s3 + $0x8] sm:$0xff]   ;;  %v30_v7 = vpack.c.bf16 %v29_v4, %v28_v3 }
   0x4   :  { %294 = vmatpush3.bf16.msra.mxu1 %v312_v5 }
   0x5   :  { %295 = vmatprep.subr.bf16.mxu1 %v348_v1 }
   0x6   :  { %288 = vmatpush3.bf16.msra.mxu0 %v311_v2 }
   0x7   :  { %12 = vsyncpa [#allocation3], 0  ;;  %v314_v8 = vld [vmem:[%s451_s3 + $0x10] sm:$0xff]   ;;  %v315_v9 = vld [vmem:[%s451_s3 + $0x18] sm:$0xff]   ;;  %vm141_vm2 = vcmask 523264   ;;  %s350_s20 = smov [#allocation2]  }
   0x8   :  { %296 = vmatpush3.bf16.msra.mxu1 %v313_v6  ;;  %v265_v10 = vld [vmem:[%s450_s2] ss:$0 sm:$0xff]  ;;  %s254_s21 = sshll.u32 %s350_s20, 4  ;;  %s255_s21 = int_to_ptr.vmem [resolvable:$true] %s254_s21 }
   0x9   :  { %290 = vmatmul.mubr.msk.bf16.vlgmr.msra.gmra.mrb[0].mxu0 %vm54_vm1, %v30_v7  ;;  %297 = vmatprep.subr.bf16.mxu1 %v348_v1  ;;  %v269_v20 = vld [vmem:[%s452_s4] ss:$0 sm:$0xff]  ;;  %s324_s22 = scalar_lea.vmem %s255_s21, 256  ;;  %p329_p1 = scmp.lt.s32.totalorder %s255_s21, %s255_s21 }
   0xa   :  { %v275_v58 = vld [vmem:[%s453_s5] ss:$0 sm:$0xff]  ;;  %p325_p0 = scmp.ne.s32.totalorder %s255_s21, %s324_s22  ;;  %p330_p2 = scmp.lt.s32.totalorder %s324_s22, %s324_s22 }
   0xb   :  { %v276_v60 = vld [vmem:[%s454_s6] ss:$0 sm:$0xff] }
   0xc   :  { %298 = vmatpush3.bf16.msra.mxu1 %v314_v8  ;;  %p331_p3 = por %p330_p2, %p329_p1 }
   0xd   :  { %299 = vmatprep.subr.bf16.mxu1 %v348_v1 }
   0xe   :  { %p332_p4 = pnand %p331_p3, %p325_p0 }
  0x10   :  { %300 = vmatpush3.bf16.msra.mxu1 %v315_v9 }
  0xdc   :  { %v92_v11 = vpop.f32.mrb[0].mxu0 }
  0xdd   :  { %v93_v12 = vadd.f32 %v265_v10, %v92_v11  ;;  %v291_v13 = vpop.f32.mrb[1].mxu0 }
  0xde   :  { %v95_v14 = vpop.f32.mrb[2].mxu0 }
  0xdf   :  { %v96_v15 = vadd.f32 %v265_v10, %v95_v14  ;;  %v292_v16 = vpop.f32.mrb[3].mxu0  ;;  %v99_v17 = vmax.f32 %v93_v12, 0.0 }
  0xe1   :  { %v100_v18 = vmax.f32 %v96_v15, 0.0 }
  0xe3   :  { %v101_v19 = vpack.c.bf16 %v100_v18, %v99_v17 }
  0xe5   :  { %302 = vmatmul.mubr.msk.bf16.vlgmr.msra.gmra.mrb[0].mxu1 %vm141_vm2, %v101_v19 }
 0x1b8   :  { %v179_v21 = vpop.f32.mrb[0].mxu1 }
 0x1b9   :  { %v180_v22 = vadd.f32 %v269_v20, %v179_v21  ;;  %v303_v23 = vpop.f32.mrb[1].mxu1 }
 0x1ba   :  { %v182_v24 = vpop.f32.mrb[2].mxu1 }
 0x1bb   :  { %v183_v25 = vadd.f32 %v269_v20, %v182_v24  ;;  %v304_v26 = vpop.f32.mrb[3].mxu1  ;;  %v186_v27 = vadd.f32 %v180_v22, %v28_v3 }
 0x1bd   :  { %v188_v28 = vsel %vm54_vm1, %v186_v27, 0.0  ;;  %v187_v29 = vadd.f32 %v183_v25, %v29_v4 }
 0x1be   :  { %189 = vadd.xlane.f32.xlu0 %v188_v28 }
 0x1bf   :  { %v191_v30 = vsel %vm54_vm1, %v187_v29, 0.0 }
 0x1c2   :  { %192 = vadd.xlane.f32.xlu0 %v191_v30 }
 0x24b   :  { %v190_v31 = vpop.xlane.xlu0 %189 }
 0x24c   :  { %v195_v32 = vmul.f32 0.03125, %v190_v31 }
 0x24e   :  { %v197_v33 = vsub.f32 %v186_v27, %v195_v32 }
 0x24f   :  { %v193_v34 = vpop.xlane.xlu0 %192 }
 0x250   :  { %v196_v35 = vmul.f32 0.03125, %v193_v34  ;;  %v199_v36 = vmul.f32 %v197_v33, %v197_v33 }
 0x252   :  { %v198_v37 = vsub.f32 %v187_v29, %v196_v35  ;;  %v201_v38 = vsel %vm54_vm1, %v199_v36, 0.0 }
 0x253   :  { %202 = vadd.xlane.f32.xlu1 %v201_v38 }
 0x254   :  { %v200_v39 = vmul.f32 %v198_v37, %v198_v37 }
 0x256   :  { %v204_v40 = vsel %vm54_vm1, %v200_v39, 0.0 }
 0x257   :  { %205 = vadd.xlane.f32.xlu1 %v204_v40 }
 0x2e0   :  { %v203_v41 = vpop.xlane.xlu1 %202 }
 0x2e1   :  { %v207_v42 = vmul.f32 0.032258064, %v203_v41 }
 0x2e3   :  { %316 = vrsqrt.f32 %v207_v42  ;;  %vm211_vm3 = vcmp.eq.f32.partialorder %v207_v42, inf  ;;  %v214_v47 = vand.u32 2147483648, %v207_v42  ;;  %vm213_vm4 = vcmp.eq.f32.partialorder %v207_v42, 0.0 }
 0x2e4   :  { %v206_v43 = vpop.xlane.xlu1 %205 }
 0x2e5   :  { %v208_v44 = vmul.f32 0.032258064, %v206_v43 }
 0x2e7   :  { %318 = vrsqrt.f32 %v208_v44  ;;  %vm218_vm5 = vcmp.eq.f32.partialorder %v208_v44, inf  ;;  %v221_v53 = vand.u32 2147483648, %v208_v44  ;;  %vm220_vm6 = vcmp.eq.f32.partialorder %v208_v44, 0.0 }
 0x2ed   :  { %v317_v45 = vpop.eup %316 }
 0x2ee   :  { %v210_v46 = vmul.f32 %v317_v45, %v207_v42 }
 0x2f0   :  { %v212_v48 = vsel %vm211_vm3, %v207_v42, %v210_v46 }
 0x2f1   :  { %v319_v49 = vpop.eup %318  ;;  %v215_v50 = vsel %vm213_vm4, %v214_v47, %v212_v48 }
 0x2f2   :  { %v223_v51 = vadd.f32 0.001, %v215_v50  ;;  %v217_v52 = vmul.f32 %v319_v49, %v208_v44 }
 0x2f4   :  { %320 = vrcp.f32 %v223_v51  ;;  %v219_v54 = vsel %vm218_vm5, %v208_v44, %v217_v52 }
 0x2f5   :  { %v222_v55 = vsel %vm220_vm6, %v221_v53, %v219_v54 }
 0x2f6   :  { %v224_v56 = vadd.f32 0.001, %v222_v55 }
 0x2f8   :  { %322 = vrcp.f32 %v224_v56 }
 0x2fe   :  { %v321_v57 = vpop.eup %320 }
 0x2ff   :  { %v227_v59 = vmul.f32 %v321_v57, %v197_v33 }
 0x301   :  { %v236_v61 = vmul.f32 %v275_v58, %v227_v59 }
 0x302   :  { %v323_v62 = vpop.eup %322 }
 0x303   :  { %v228_v63 = vmul.f32 %v323_v62, %v198_v37  ;;  %v245_v0 = vadd.f32 %v276_v60, %v236_v61 }
 0x305   :  { %v237_v1 = vmul.f32 %v275_v58, %v228_v63  ;;  %247 = vst.msk [vmem:[#allocation2] sm:$0xff] %vm54_vm1, %v245_v0 }
 0x307   :  { %v246_v2 = vadd.f32 %v276_v60, %v237_v1 }
 0x309   :  { %248 = vst.msk [vmem:[#allocation2 + $0x8] sm:$0xff] %vm54_vm1, %v246_v2 }
 0x30a   :  { %335 = shalt.err (!%p332_p4)
}
 0x30b   :  { %s336_s23 = scalar_lea.hbm %s455_s7, 256 }
 0x30c   :  { %p337_p5 = scmp.ne.s32.totalorder %s455_s7, %s336_s23  ;;  %p340_p6 = scmp.lt.u32.totalorder %s336_s23, %s455_s7 }
 0x30e   :  { %p342_p7 = pnand %p340_p6, %p337_p5 }
 0x310   :  { %345 = shalt.err (!%p342_p7)
}
 0x311   :  { %s351_s28 = smov 128   ;;  %s352_s29 = smov 8  }
 0x312   :  { %260 = dma.vmem_to_hbm [thread:$0]  %s255_s21, 256, %s455_s7, [#allocation3], %s351_s28, %s351_s28, %s352_s29  }
 0x313   :  { %346 = dma.done.wait [#allocation3], 256  }
 0x314   :  { %347 = vsyncadd [#allocation3], 4294967040 }
 0x315   :  { %264 = vsyncpa [#allocation3], 1 }

// kernel: tpu_custom_call.1
= control target key start
LH: loop header
LB: loop body
LE: loop exit
PB: predicated region body
PF: predicated region fallthrough
CT: control target
= control target key end

     0   :  { %v348_v1 = vmov 0.0   ;;  %vm349_vm0 = vmmov 0   ;;  %vm54_vm1 = vcmask 261120   ;;  %s448_s0 = inlined_call_operand.vmem [shape: f32[16,32], index: 0, kind: input, shape index: {}]   ;;  %s449_s1 = inlined_call_operand.vmem [shape: bf16[32,64], index: 1, kind: input, shape index: {}]   ;;  %s450_s2 = inlined_call_operand.vmem [shape: f32[1,64], index: 2, kind: input, shape index: {}]   ;;  %s451_s3 = inlined_call_operand.vmem [shape: bf16[64,32], index: 3, kind: input, shape index: {}]   ;;  %s452_s4 = inlined_call_operand.vmem [shape: f32[1,32], index: 4, kind: input, shape index: {}]   ;;  %s453_s5 = inlined_call_operand.vmem [shape: f32[1,32], index: 5, kind: input, shape index: {}]   ;;  %s454_s6 = inlined_call_operand.vmem [shape: f32[1,32], index: 6, kind: input, shape index: {}]   ;;  %s455_s7 = inlined_call_operand.hbm [shape: f32[16,32], index: 7, kind: output, shape index: {}]  }
   0x1   :  { %v310_v0 = vld [vmem:[%s449_s1] sm:$0xff]   ;;  %285 = vmatprep.subr.bf16.mxu0 %v348_v1  ;;  %v311_v2 = vld [vmem:[%s449_s1 + $0x8] sm:$0xff]   ;;  %293 = vmatprep.subr.bf16.mxu1 %v348_v1 }
   0x2   :  { %286 = vmatpush3.bf16.msra.mxu0 %v310_v0  ;;  %289 = vmatprep.mubr.msk.bf16.mxu0 %vm349_vm0, %v348_v1  ;;  %v28_v3 = vld [vmem:[%s448_s0] sm:$0xff]  ;;  %v29_v4 = vld [vmem:[%s448_s0 + $0x8] sm:$0xff] }
   0x3   :  { %287 = vmatprep.subr.bf16.mxu0 %v348_v1  ;;  %v312_v5 = vld [vmem:[%s451_s3] sm:$0xff]   ;;  %301 = vmatprep.mubr.msk.bf16.mxu1 %vm349_vm0, %v348_v1  ;;  %v313_v6 = vld [vmem:[%s451_s3 + $0x8] sm:$0xff]   ;;  %v30_v7 = vpack.c.bf16 %v29_v4, %v28_v3 }
   0x4   :  { %294 = vmatpush3.bf16.msra.mxu1 %v312_v5 }
   0x5   :  { %295 = vmatprep.subr.bf16.mxu1 %v348_v1 }
   0x6   :  { %288 = vmatpush3.bf16.msra.mxu0 %v311_v2 }
   0x7   :  { %12 = vsyncpa [#allocation3], 0  ;;  %v314_v8 = vld [vmem:[%s451_s3 + $0x10] sm:$0xff]   ;;  %v315_v9 = vld [vmem:[%s451_s3 + $0x18] sm:$0xff]   ;;  %vm141_vm2 = vcmask 523264   ;;  %s350_s20 = smov [#allocation2]  }
   0x8   :  { %296 = vmatpush3.bf16.msra.mxu1 %v313_v6  ;;  %v265_v10 = vld [vmem:[%s450_s2] ss:$0 sm:$0xff]  ;;  %s254_s21 = sshll.u32 %s350_s20, 4  ;;  %s255_s21 = int_to_ptr.vmem [resolvable:$true] %s254_s21 }
   0x9   :  { %290 = vmatmul.mubr.msk.bf16.vlgmr.msra.gmra.mrb[0].mxu0 %vm54_vm1, %v30_v7  ;;  %297 = vmatprep.subr.bf16.mxu1 %v348_v1  ;;  %v269_v20 = vld [vmem:[%s452_s4] ss:$0 sm:$0xff]  ;;  %s324_s22 = scalar_lea.vmem %s255_s21, 256  ;;  %p329_p1 = scmp.lt.s32.totalorder %s255_s21, %s255_s21 }
   0xa   :  { %v275_v58 = vld [vmem:[%s453_s5] ss:$0 sm:$0xff]  ;;  %p325_p0 = scmp.ne.s32.totalorder %s255_s21, %s324_s22  ;;  %p330_p2 = scmp.lt.s32.totalorder %s324_s22, %s324_s22 }
   0xb   :  { %v276_v60 = vld [vmem:[%s454_s6] ss:$0 sm:$0xff] }
   0xc   :  { %298 = vmatpush3.bf16.msra.mxu1 %v314_v8  ;;  %p331_p3 = por %p330_p2, %p329_p1 }
   0xd   :  { %299 = vmatprep.subr.bf16.mxu1 %v348_v1 }
   0xe   :  { %p332_p4 = pnand %p331_p3, %p325_p0 }
  0x10   :  { %300 = vmatpush3.bf16.msra.mxu1 %v315_v9 }
  0xdc   :  { %v92_v11 = vpop.f32.mrb[0].mxu0 }
  0xdd   :  { %v93_v12 = vadd.f32 %v265_v10, %v92_v11  ;;  %v291_v13 = vpop.f32.mrb[1].mxu0 }
  0xde   :  { %v95_v14 = vpop.f32.mrb[2].mxu0 }
  0xdf   :  { %v96_v15 = vadd.f32 %v265_v10, %v95_v14  ;;  %v292_v16 = vpop.f32.mrb[3].mxu0  ;;  %v99_v17 = vmax.f32 %v93_v12, 0.0 }
  0xe1   :  { %v100_v18 = vmax.f32 %v96_v15, 0.0 }
  0xe3   :  { %v101_v19 = vpack.c.bf16 %v100_v18, %v99_v17 }
  0xe5   :  { %302 = vmatmul.mubr.msk.bf16.vlgmr.msra.gmra.mrb[0].mxu1 %vm141_vm2, %v101_v19 }
 0x1b8   :  { %v179_v21 = vpop.f32.mrb[0].mxu1 }
 0x1b9   :  { %v180_v22 = vadd.f32 %v269_v20, %v179_v21  ;;  %v303_v23 = vpop.f32.mrb[1].mxu1 }
 0x1ba   :  { %v182_v24 = vpop.f32.mrb[2].mxu1 }
 0x1bb   :  { %v183_v25 = vadd.f32 %v269_v20, %v182_v24  ;;  %v304_v26 = vpop.f32.mrb[3].mxu1  ;;  %v186_v27 = vadd.f32 %v180_v22, %v28_v3 }
 0x1bd   :  { %v188_v28 = vsel %vm54_vm1, %v186_v27, 0.0  ;;  %v187_v29 = vadd.f32 %v183_v25, %v29_v4 }
 0x1be   :  { %189 = vadd.xlane.f32.xlu0 %v188_v28 }
 0x1bf   :  { %v191_v30 = vsel %vm54_vm1, %v187_v29, 0.0 }
 0x1c2   :  { %192 = vadd.xlane.f32.xlu0 %v191_v30 }
 0x24b   :  { %v190_v31 = vpop.xlane.xlu0 %189 }
 0x24c   :  { %v195_v32 = vmul.f32 0.03125, %v190_v31 }
 0x24e   :  { %v197_v33 = vsub.f32 %v186_v27, %v195_v32 }
 0x24f   :  { %v193_v34 = vpop.xlane.xlu0 %192 }
 0x250   :  { %v196_v35 = vmul.f32 0.03125, %v193_v34  ;;  %v199_v36 = vmul.f32 %v197_v33, %v197_v33 }
 0x252   :  { %v198_v37 = vsub.f32 %v187_v29, %v196_v35  ;;  %v201_v38 = vsel %vm54_vm1, %v199_v36, 0.0 }
 0x253   :  { %202 = vadd.xlane.f32.xlu1 %v201_v38 }
 0x254   :  { %v200_v39 = vmul.f32 %v198_v37, %v198_v37 }
 0x256   :  { %v204_v40 = vsel %vm54_vm1, %v200_v39, 0.0 }
 0x257   :  { %205 = vadd.xlane.f32.xlu1 %v204_v40 }
 0x2e0   :  { %v203_v41 = vpop.xlane.xlu1 %202 }
 0x2e1   :  { %v207_v42 = vmul.f32 0.032258064, %v203_v41 }
 0x2e3   :  { %316 = vrsqrt.f32 %v207_v42  ;;  %vm211_vm3 = vcmp.eq.f32.partialorder %v207_v42, inf  ;;  %v214_v47 = vand.u32 2147483648, %v207_v42  ;;  %vm213_vm4 = vcmp.eq.f32.partialorder %v207_v42, 0.0 }
 0x2e4   :  { %v206_v43 = vpop.xlane.xlu1 %205 }
 0x2e5   :  { %v208_v44 = vmul.f32 0.032258064, %v206_v43 }
 0x2e7   :  { %318 = vrsqrt.f32 %v208_v44  ;;  %vm218_vm5 = vcmp.eq.f32.partialorder %v208_v44, inf  ;;  %v221_v53 = vand.u32 2147483648, %v208_v44  ;;  %vm220_vm6 = vcmp.eq.f32.partialorder %v208_v44, 0.0 }
 0x2ed   :  { %v317_v45 = vpop.eup %316 }
 0x2ee   :  { %v210_v46 = vmul.f32 %v317_v45, %v207_v42 }
 0x2f0   :  { %v212_v48 = vsel %vm211_vm3, %v207_v42, %v210_v46 }
 0x2f1   :  { %v319_v49 = vpop.eup %318  ;;  %v215_v50 = vsel %vm213_vm4, %v214_v47, %v212_v48 }
 0x2f2   :  { %v223_v51 = vadd.f32 0.001, %v215_v50  ;;  %v217_v52 = vmul.f32 %v319_v49, %v208_v44 }
 0x2f4   :  { %320 = vrcp.f32 %v223_v51  ;;  %v219_v54 = vsel %vm218_vm5, %v208_v44, %v217_v52 }
 0x2f5   :  { %v222_v55 = vsel %vm220_vm6, %v221_v53, %v219_v54 }
 0x2f6   :  { %v224_v56 = vadd.f32 0.001, %v222_v55 }
 0x2f8   :  { %322 = vrcp.f32 %v224_v56 }
 0x2fe   :  { %v321_v57 = vpop.eup %320 }
 0x2ff   :  { %v227_v59 = vmul.f32 %v321_v57, %v197_v33 }
 0x301   :  { %v236_v61 = vmul.f32 %v275_v58, %v227_v59 }
 0x302   :  { %v323_v62 = vpop.eup %322 }
 0x303   :  { %v228_v63 = vmul.f32 %v323_v62, %v198_v37  ;;  %v245_v0 = vadd.f32 %v276_v60, %v236_v61 }
 0x305   :  { %v237_v1 = vmul.f32 %v275_v58, %v228_v63  ;;  %247 = vst.msk [vmem:[#allocation2] sm:$0xff] %vm54_vm1, %v245_v0 }
 0x307   :  { %v246_v2 = vadd.f32 %v276_v60, %v237_v1 }
 0x309   :  { %248 = vst.msk [vmem:[#allocation2 + $0x8] sm:$0xff] %vm54_vm1, %v246_v2 }
 0x30a   :  { %335 = shalt.err (!%p332_p4)
}
 0x30b   :  { %s336_s23 = scalar_lea.hbm %s455_s7, 256 }
 0x30c   :  { %p337_p5 = scmp.ne.s32.totalorder %s455_s7, %s336_s23  ;;  %p340_p6 = scmp.lt.u32.totalorder %s336_s23, %s455_s7 }
 0x30e   :  { %p342_p7 = pnand %p340_p6, %p337_p5 }
 0x310   :  { %345 = shalt.err (!%p342_p7)
}
 0x311   :  { %s351_s28 = smov 128   ;;  %s352_s29 = smov 8  }
 0x312   :  { %260 = dma.vmem_to_hbm [thread:$0]  %s255_s21, 256, %s455_s7, [#allocation3], %s351_s28, %s351_s28, %s352_s29  }
 0x313   :  { %346 = dma.done.wait [#allocation3], 256  }
 0x314   :  { %347 = vsyncadd [#allocation3], 4294967040 }
 0x315   :  { %264 = vsyncpa [#allocation3], 1 }

</bundles_post_ra>
